<compile_context>
chip_gen: v5e
topology: v5e:2x2
jax: 0.10.0
libtpu: 0.0.40
codegen_flags: <defaults>
</compile_context>

<pallas_src>
import functools

import jax
import jax.numpy as jnp
from jax.experimental import pallas as pl
from jax.experimental.pallas import tpu as pltpu


# ----------------------------- fused Pallas kernel ---------------------------

def _fused_sage_mlp_kernel(a_ref, x_ref,
                           w1_ref, b1_ref, w2_ref, b2_ref, w3_ref, b3_ref,
                           fc1w_ref, fc1b_ref, fc2w_ref, fc2b_ref,
                           fc3w_ref, fc3b_ref,
                           h1_ref, h2_ref, h3_ref, out_ref,
                           *, hidden, eps):
    # A_mean lives in VMEM once and is reused by all three conv layers.
    a = a_ref[...]

    def sage_relu(xin, w_ref, b_ref):
        # One MXU push covers both weight paths:
        #   y = xin @ [W_l | W_r]  -> (N, 2H)
        #   out = A_mean @ y[:, :H] + y[:, H:] + b ; relu
        y = jnp.dot(xin, w_ref[...], preferred_element_type=jnp.float32)
        y_l = y[:, :hidden]
        y_r = y[:, hidden:]
        z = jnp.dot(a, y_l, preferred_element_type=jnp.float32) + y_r + b_ref[...]
        return jnp.maximum(z, 0.0)

    h1 = sage_relu(x_ref[...], w1_ref, b1_ref)
    h1_ref[...] = h1
    h2 = sage_relu(h1, w2_ref, b2_ref)
    h2_ref[...] = h2
    h3 = sage_relu(h2, w3_ref, b3_ref)
    h3_ref[...] = h3

    def lin_bn_relu(h, w_ref, b_ref):
        z = jnp.dot(h, w_ref[...], preferred_element_type=jnp.float32) + b_ref[...]
        # single-pass batch statistics (biased var), BN training mode, gamma=1 beta=0
        mu = jnp.mean(z, axis=0, keepdims=True)
        ex2 = jnp.mean(z * z, axis=0, keepdims=True)
        var = ex2 - mu * mu
        return jnp.maximum((z - mu) * jax.lax.rsqrt(var + eps), 0.0)

    g = lin_bn_relu(h3, fc1w_ref, fc1b_ref)     # (N, hidden1)
    g = lin_bn_relu(g, fc2w_ref, fc2b_ref)      # (N, hidden2)
    out_ref[...] = (jnp.dot(g, fc3w_ref[...], preferred_element_type=jnp.float32)
                    + fc3b_ref[...])            # (N, 1)


# --------------------------------- JAX glue ----------------------------------

def build_mean_adj(edge_index, num_nodes):
    """Dense row-normalized adjacency: A[i, j] = (#edges j->i) / in_degree(i)."""
    src = edge_index[0]
    dst = edge_index[1]
    a = jnp.zeros((num_nodes, num_nodes), jnp.float32).at[dst, src].add(1.0)
    deg = a.sum(axis=1, keepdims=True)
    return a / jnp.maximum(deg, 1.0)   # nodes with no in-edges aggregate to 0


def init_params(key, in_channels, hidden, hidden1=128, hidden2=64):
    ks = jax.random.split(key, 9)

    def xavier(k, fan_in, fan_out):
        limit = jnp.sqrt(6.0 / (fan_in + fan_out))
        return jax.random.uniform(k, (fan_in, fan_out), jnp.float32, -limit, limit)

    def sage_w(k1, k2, fan_in, fan_out):
        # pre-stacked [W_l | W_r] along the output axis -> one MXU push in-kernel
        return jnp.concatenate([xavier(k1, fan_in, fan_out),
                                xavier(k2, fan_in, fan_out)], axis=1)

    return {
        # SAGEConv 1..3 (stacked weights (F_in, 2H); single bias per conv = lin_l bias)
        "conv1_w": sage_w(ks[0], ks[1], in_channels, hidden),
        "conv1_b": jnp.zeros((hidden,), jnp.float32),
        "conv2_w": sage_w(ks[2], ks[3], hidden, hidden),
        "conv2_b": jnp.zeros((hidden,), jnp.float32),
        "conv3_w": sage_w(ks[4], ks[5], hidden, hidden),
        "conv3_b": jnp.zeros((hidden,), jnp.float32),
        # fc head (xavier weights, zero biases — matches init_weights)
        "fc1_w": xavier(ks[6], hidden, hidden1),
        "fc1_b": jnp.zeros((hidden1,), jnp.float32),
        "fc2_w": xavier(ks[7], hidden1, hidden2),
        "fc2_b": jnp.zeros((hidden2,), jnp.float32),
        "fc3_w": xavier(ks[8], hidden2, 1),
        "fc3_b": jnp.zeros((1,), jnp.float32),
    }


def sage_onehot_mlp_hetero2_forward(params, x, edge_index, eps=1e-5):
    n = x.shape[0]
    x2d = x.reshape(n, -1).astype(jnp.float32)          # flatten(start_dim=1)
    a_mean = build_mean_adj(edge_index, n)

    hidden = params["conv1_w"].shape[1] // 2
    hidden1 = params["fc1_w"].shape[1]
    hidden2 = params["fc2_w"].shape[1]

    inputs = (
        a_mean, x2d,
        params["conv1_w"], params["conv1_b"].reshape(1, -1),
        params["conv2_w"], params["conv2_b"].reshape(1, -1),
        params["conv3_w"], params["conv3_b"].reshape(1, -1),
        params["fc1_w"], params["fc1_b"].reshape(1, -1),
        params["fc2_w"], params["fc2_b"].reshape(1, -1),
        params["fc3_w"], params["fc3_b"].reshape(1, -1),
    )

    out_shapes = (
        jax.ShapeDtypeStruct((n, hidden), jnp.float32),   # h1
        jax.ShapeDtypeStruct((n, hidden), jnp.float32),   # h2
        jax.ShapeDtypeStruct((n, hidden), jnp.float32),   # h3
        jax.ShapeDtypeStruct((n, 1), jnp.float32),        # head output
    )

    # Advisory cost estimate so XLA can schedule the scatter/reshape around it.
    f_in = x2d.shape[1]
    flops, fin = 0, f_in
    for _ in range(3):
        flops += 2 * n * fin * (2 * hidden) + 2 * n * n * hidden
        fin = hidden
    flops += 2 * n * hidden * hidden1 + 2 * n * hidden1 * hidden2 + 2 * n * hidden2
    bytes_accessed = 4 * (sum(int(a.size) for a in inputs) + 3 * n * hidden + n)

    kern = functools.partial(_fused_sage_mlp_kernel, hidden=hidden, eps=eps)
    h1, h2, h3, out = pl.pallas_call(
        kern,
        out_shape=out_shapes,
        # whole arrays are tiny -> single-block call, everything VMEM-resident
        compiler_params=pltpu.CompilerParams(vmem_limit_bytes=32 * 1024 * 1024),
        cost_estimate=pl.CostEstimate(flops=int(flops),
                                      transcendentals=int(hidden1 + hidden2),
                                      bytes_accessed=int(bytes_accessed)),
    )(*inputs)

    return out[:, 0], [h1, h2, h3]


# ----------------------------------- main ------------------------------------

if __name__ == "__main__":
    key = jax.random.PRNGKey(0)
    k_x, k_e, k_p = jax.random.split(key, 3)

    num_nodes = 32
    feat_shape = (4, 4)                 # per-node feature grid, flattened to 16
    in_channels = feat_shape[0] * feat_shape[1]
    hidden_channels = 32
    num_edges = 64

    x = jax.random.normal(k_x, (num_nodes,) + feat_shape, dtype=jnp.float32)
    edge_index = jax.random.randint(k_e, (2, num_edges), 0, num_nodes, dtype=jnp.int32)

    params = init_params(k_p, in_channels, hidden_channels)

    fwd = jax.jit(sage_onehot_mlp_hetero2_forward)
    out, embeddings = fwd(params, x, edge_index)
    out = jax.block_until_ready(out)
    embeddings = [jax.block_until_ready(e) for e in embeddings]

    assert out.shape == (num_nodes,)
    assert len(embeddings) == 3
    for e in embeddings:
        assert e.shape == (num_nodes, hidden_channels)
    assert bool(jnp.all(jnp.isfinite(out)))

    print("KERNEL_OK")
</pallas_src>

<mosaic_0001>
module attributes {stable_mosaic.version = 11 : i64} {
  func.func @_fused_sage_mlp_kernel(%arg0: memref<32x32xf32, #tpu.memory_space<vmem>>, %arg1: memref<32x16xf32, #tpu.memory_space<vmem>>, %arg2: memref<16x64xf32, #tpu.memory_space<vmem>>, %arg3: memref<1x32xf32, #tpu.memory_space<vmem>>, %arg4: memref<32x64xf32, #tpu.memory_space<vmem>>, %arg5: memref<1x32xf32, #tpu.memory_space<vmem>>, %arg6: memref<32x64xf32, #tpu.memory_space<vmem>>, %arg7: memref<1x32xf32, #tpu.memory_space<vmem>>, %arg8: memref<32x128xf32, #tpu.memory_space<vmem>>, %arg9: memref<1x128xf32, #tpu.memory_space<vmem>>, %arg10: memref<128x64xf32, #tpu.memory_space<vmem>>, %arg11: memref<1x64xf32, #tpu.memory_space<vmem>>, %arg12: memref<64x1xf32, #tpu.memory_space<vmem>>, %arg13: memref<1x1xf32, #tpu.memory_space<vmem>>, %arg14: memref<32x32xf32, #tpu.memory_space<vmem>>, %arg15: memref<32x32xf32, #tpu.memory_space<vmem>>, %arg16: memref<32x32xf32, #tpu.memory_space<vmem>>, %arg17: memref<32x1xf32, #tpu.memory_space<vmem>>) attributes {dimension_semantics = [], scalar_prefetch = 0 : i64, scratch_operands = 0 : i64, tpu.core_type = #tpu.core_type<tc>} {
    %c0 = arith.constant 0 : index
    %c0_0 = arith.constant 0 : index
    %0 = vector.load %arg0[%c0, %c0_0] : memref<32x32xf32, #tpu.memory_space<vmem>>, vector<32x32xf32>
    %c0_1 = arith.constant 0 : index
    %c0_2 = arith.constant 0 : index
    %1 = vector.load %arg1[%c0_1, %c0_2] : memref<32x16xf32, #tpu.memory_space<vmem>>, vector<32x16xf32>
    %c0_3 = arith.constant 0 : index
    %c0_4 = arith.constant 0 : index
    %2 = vector.load %arg2[%c0_3, %c0_4] : memref<16x64xf32, #tpu.memory_space<vmem>>, vector<16x64xf32>
    %cst = arith.constant dense<0.000000e+00> : vector<32x64xf32>
    %3 = tpu.matmul %1, %2, %cst {dimension_numbers = #tpu.dot_dimension_numbers<[1], [0], [0], [1], [0, 0, 1, 1], [], []>} : vector<32x16xf32>, vector<16x64xf32>, vector<32x64xf32> -> vector<32x64xf32>
    %4 = vector.extract_strided_slice %3 {offsets = [0, 0], sizes = [32, 32], strides = [1, 1]} : vector<32x64xf32> to vector<32x32xf32>
    %5 = vector.extract_strided_slice %3 {offsets = [0, 32], sizes = [32, 32], strides = [1, 1]} : vector<32x64xf32> to vector<32x32xf32>
    %cst_5 = arith.constant dense<0.000000e+00> : vector<32x32xf32>
    %6 = tpu.matmul %0, %4, %cst_5 {dimension_numbers = #tpu.dot_dimension_numbers<[1], [0], [0], [1], [0, 0, 1, 1], [], []>} : vector<32x32xf32>, vector<32x32xf32>, vector<32x32xf32> -> vector<32x32xf32>
    %7 = arith.addf %6, %5 : vector<32x32xf32>
    %c0_6 = arith.constant 0 : index
    %c0_7 = arith.constant 0 : index
    %8 = vector.load %arg3[%c0_6, %c0_7] : memref<1x32xf32, #tpu.memory_space<vmem>>, vector<1x32xf32>
    %9 = vector.broadcast %8 : vector<1x32xf32> to vector<32x32xf32>
    %10 = arith.addf %7, %9 : vector<32x32xf32>
    %cst_8 = arith.constant 0.000000e+00 : f32
    %11 = vector.broadcast %cst_8 : f32 to vector<32x32xf32>
    %12 = arith.maximumf %10, %11 : vector<32x32xf32>
    %c0_9 = arith.constant 0 : index
    %c0_10 = arith.constant 0 : index
    %13 = vector.load %arg14[%c0_9, %c0_10] : memref<32x32xf32, #tpu.memory_space<vmem>>, vector<32x32xf32>
    tpu.vector_store %arg14[%c0_9, %c0_10], %12 {strides = array<i32>} : memref<32x32xf32, #tpu.memory_space<vmem>>, vector<32x32xf32>,
    %c0_11 = arith.constant 0 : index
    %c0_12 = arith.constant 0 : index
    %14 = vector.load %arg4[%c0_11, %c0_12] : memref<32x64xf32, #tpu.memory_space<vmem>>, vector<32x64xf32>
    %cst_13 = arith.constant dense<0.000000e+00> : vector<32x64xf32>
    %15 = tpu.matmul %12, %14, %cst_13 {dimension_numbers = #tpu.dot_dimension_numbers<[1], [0], [0], [1], [0, 0, 1, 1], [], []>} : vector<32x32xf32>, vector<32x64xf32>, vector<32x64xf32> -> vector<32x64xf32>
    %16 = vector.extract_strided_slice %15 {offsets = [0, 0], sizes = [32, 32], strides = [1, 1]} : vector<32x64xf32> to vector<32x32xf32>
    %17 = vector.extract_strided_slice %15 {offsets = [0, 32], sizes = [32, 32], strides = [1, 1]} : vector<32x64xf32> to vector<32x32xf32>
    %cst_14 = arith.constant dense<0.000000e+00> : vector<32x32xf32>
    %18 = tpu.matmul %0, %16, %cst_14 {dimension_numbers = #tpu.dot_dimension_numbers<[1], [0], [0], [1], [0, 0, 1, 1], [], []>} : vector<32x32xf32>, vector<32x32xf32>, vector<32x32xf32> -> vector<32x32xf32>
    %19 = arith.addf %18, %17 : vector<32x32xf32>
    %c0_15 = arith.constant 0 : index
    %c0_16 = arith.constant 0 : index
    %20 = vector.load %arg5[%c0_15, %c0_16] : memref<1x32xf32, #tpu.memory_space<vmem>>, vector<1x32xf32>
    %21 = vector.broadcast %20 : vector<1x32xf32> to vector<32x32xf32>
    %22 = arith.addf %19, %21 : vector<32x32xf32>
    %cst_17 = arith.constant 0.000000e+00 : f32
    %23 = vector.broadcast %cst_17 : f32 to vector<32x32xf32>
    %24 = arith.maximumf %22, %23 : vector<32x32xf32>
    %c0_18 = arith.constant 0 : index
    %c0_19 = arith.constant 0 : index
    %25 = vector.load %arg15[%c0_18, %c0_19] : memref<32x32xf32, #tpu.memory_space<vmem>>, vector<32x32xf32>
    tpu.vector_store %arg15[%c0_18, %c0_19], %24 {strides = array<i32>} : memref<32x32xf32, #tpu.memory_space<vmem>>, vector<32x32xf32>,
    %c0_20 = arith.constant 0 : index
    %c0_21 = arith.constant 0 : index
    %26 = vector.load %arg6[%c0_20, %c0_21] : memref<32x64xf32, #tpu.memory_space<vmem>>, vector<32x64xf32>
    %cst_22 = arith.constant dense<0.000000e+00> : vector<32x64xf32>
    %27 = tpu.matmul %24, %26, %cst_22 {dimension_numbers = #tpu.dot_dimension_numbers<[1], [0], [0], [1], [0, 0, 1, 1], [], []>} : vector<32x32xf32>, vector<32x64xf32>, vector<32x64xf32> -> vector<32x64xf32>
    %28 = vector.extract_strided_slice %27 {offsets = [0, 0], sizes = [32, 32], strides = [1, 1]} : vector<32x64xf32> to vector<32x32xf32>
    %29 = vector.extract_strided_slice %27 {offsets = [0, 32], sizes = [32, 32], strides = [1, 1]} : vector<32x64xf32> to vector<32x32xf32>
    %cst_23 = arith.constant dense<0.000000e+00> : vector<32x32xf32>
    %30 = tpu.matmul %0, %28, %cst_23 {dimension_numbers = #tpu.dot_dimension_numbers<[1], [0], [0], [1], [0, 0, 1, 1], [], []>} : vector<32x32xf32>, vector<32x32xf32>, vector<32x32xf32> -> vector<32x32xf32>
    %31 = arith.addf %30, %29 : vector<32x32xf32>
    %c0_24 = arith.constant 0 : index
    %c0_25 = arith.constant 0 : index
    %32 = vector.load %arg7[%c0_24, %c0_25] : memref<1x32xf32, #tpu.memory_space<vmem>>, vector<1x32xf32>
    %33 = vector.broadcast %32 : vector<1x32xf32> to vector<32x32xf32>
    %34 = arith.addf %31, %33 : vector<32x32xf32>
    %cst_26 = arith.constant 0.000000e+00 : f32
    %35 = vector.broadcast %cst_26 : f32 to vector<32x32xf32>
    %36 = arith.maximumf %34, %35 : vector<32x32xf32>
    %c0_27 = arith.constant 0 : index
    %c0_28 = arith.constant 0 : index
    %37 = vector.load %arg16[%c0_27, %c0_28] : memref<32x32xf32, #tpu.memory_space<vmem>>, vector<32x32xf32>
    tpu.vector_store %arg16[%c0_27, %c0_28], %36 {strides = array<i32>} : memref<32x32xf32, #tpu.memory_space<vmem>>, vector<32x32xf32>,
    %c0_29 = arith.constant 0 : index
    %c0_30 = arith.constant 0 : index
    %38 = vector.load %arg8[%c0_29, %c0_30] : memref<32x128xf32, #tpu.memory_space<vmem>>, vector<32x128xf32>
    %cst_31 = arith.constant dense<0.000000e+00> : vector<32x128xf32>
    %39 = tpu.matmul %36, %38, %cst_31 {dimension_numbers = #tpu.dot_dimension_numbers<[1], [0], [0], [1], [0, 0, 1, 1], [], []>} : vector<32x32xf32>, vector<32x128xf32>, vector<32x128xf32> -> vector<32x128xf32>
    %c0_32 = arith.constant 0 : index
    %c0_33 = arith.constant 0 : index
    %40 = vector.load %arg9[%c0_32, %c0_33] : memref<1x128xf32, #tpu.memory_space<vmem>>, vector<1x128xf32>
    %41 = vector.broadcast %40 : vector<1x128xf32> to vector<32x128xf32>
    %42 = arith.addf %39, %41 : vector<32x128xf32>
    %cst_34 = arith.constant dense<0.000000e+00> : vector<128xf32>
    %43 = vector.multi_reduction <add>, %42, %cst_34 [0] : vector<32x128xf32> to vector<128xf32>
    %44 = vector.shape_cast %43 : vector<128xf32> to vector<1x128xf32>
    %cst_35 = arith.constant 3.200000e+01 : f32
    %45 = vector.broadcast %cst_35 : f32 to vector<1x128xf32>
    %46 = arith.divf %44, %45 : vector<1x128xf32>
    %47 = arith.mulf %42, %42 : vector<32x128xf32>
    %cst_36 = arith.constant dense<0.000000e+00> : vector<128xf32>
    %48 = vector.multi_reduction <add>, %47, %cst_36 [0] : vector<32x128xf32> to vector<128xf32>
    %49 = vector.shape_cast %48 : vector<128xf32> to vector<1x128xf32>
    %cst_37 = arith.constant 3.200000e+01 : f32
    %50 = vector.broadcast %cst_37 : f32 to vector<1x128xf32>
    %51 = arith.divf %49, %50 : vector<1x128xf32>
    %52 = arith.mulf %46, %46 : vector<1x128xf32>
    %53 = arith.subf %51, %52 : vector<1x128xf32>
    %54 = vector.broadcast %46 : vector<1x128xf32> to vector<32x128xf32>
    %55 = arith.subf %42, %54 : vector<32x128xf32>
    %cst_38 = arith.constant 9.99999974E-6 : f32
    %56 = vector.broadcast %cst_38 : f32 to vector<1x128xf32>
    %57 = arith.addf %53, %56 : vector<1x128xf32>
    %58 = math.rsqrt %57 : vector<1x128xf32>
    %59 = vector.broadcast %58 : vector<1x128xf32> to vector<32x128xf32>
    %60 = arith.mulf %55, %59 : vector<32x128xf32>
    %cst_39 = arith.constant 0.000000e+00 : f32
    %61 = vector.broadcast %cst_39 : f32 to vector<32x128xf32>
    %62 = arith.maximumf %60, %61 : vector<32x128xf32>
    %c0_40 = arith.constant 0 : index
    %c0_41 = arith.constant 0 : index
    %63 = vector.load %arg10[%c0_40, %c0_41] : memref<128x64xf32, #tpu.memory_space<vmem>>, vector<128x64xf32>
    %cst_42 = arith.constant dense<0.000000e+00> : vector<32x64xf32>
    %64 = tpu.matmul %62, %63, %cst_42 {dimension_numbers = #tpu.dot_dimension_numbers<[1], [0], [0], [1], [0, 0, 1, 1], [], []>} : vector<32x128xf32>, vector<128x64xf32>, vector<32x64xf32> -> vector<32x64xf32>
    %c0_43 = arith.constant 0 : index
    %c0_44 = arith.constant 0 : index
    %65 = vector.load %arg11[%c0_43, %c0_44] : memref<1x64xf32, #tpu.memory_space<vmem>>, vector<1x64xf32>
    %66 = vector.broadcast %65 : vector<1x64xf32> to vector<32x64xf32>
    %67 = arith.addf %64, %66 : vector<32x64xf32>
    %cst_45 = arith.constant dense<0.000000e+00> : vector<64xf32>
    %68 = vector.multi_reduction <add>, %67, %cst_45 [0] : vector<32x64xf32> to vector<64xf32>
    %69 = vector.shape_cast %68 : vector<64xf32> to vector<1x64xf32>
    %cst_46 = arith.constant 3.200000e+01 : f32
    %70 = vector.broadcast %cst_46 : f32 to vector<1x64xf32>
    %71 = arith.divf %69, %70 : vector<1x64xf32>
    %72 = arith.mulf %67, %67 : vector<32x64xf32>
    %cst_47 = arith.constant dense<0.000000e+00> : vector<64xf32>
    %73 = vector.multi_reduction <add>, %72, %cst_47 [0] : vector<32x64xf32> to vector<64xf32>
    %74 = vector.shape_cast %73 : vector<64xf32> to vector<1x64xf32>
    %cst_48 = arith.constant 3.200000e+01 : f32
    %75 = vector.broadcast %cst_48 : f32 to vector<1x64xf32>
    %76 = arith.divf %74, %75 : vector<1x64xf32>
    %77 = arith.mulf %71, %71 : vector<1x64xf32>
    %78 = arith.subf %76, %77 : vector<1x64xf32>
    %79 = vector.broadcast %71 : vector<1x64xf32> to vector<32x64xf32>
    %80 = arith.subf %67, %79 : vector<32x64xf32>
    %cst_49 = arith.constant 9.99999974E-6 : f32
    %81 = vector.broadcast %cst_49 : f32 to vector<1x64xf32>
    %82 = arith.addf %78, %81 : vector<1x64xf32>
    %83 = math.rsqrt %82 : vector<1x64xf32>
    %84 = vector.broadcast %83 : vector<1x64xf32> to vector<32x64xf32>
    %85 = arith.mulf %80, %84 : vector<32x64xf32>
    %cst_50 = arith.constant 0.000000e+00 : f32
    %86 = vector.broadcast %cst_50 : f32 to vector<32x64xf32>
    %87 = arith.maximumf %85, %86 : vector<32x64xf32>
    %c0_51 = arith.constant 0 : index
    %c0_52 = arith.constant 0 : index
    %88 = vector.load %arg12[%c0_51, %c0_52] : memref<64x1xf32, #tpu.memory_space<vmem>>, vector<64x1xf32>
    %cst_53 = arith.constant dense<0.000000e+00> : vector<32x1xf32>
    %89 = tpu.matmul %87, %88, %cst_53 {dimension_numbers = #tpu.dot_dimension_numbers<[1], [0], [0], [1], [0, 0, 1, 1], [], []>} : vector<32x64xf32>, vector<64x1xf32>, vector<32x1xf32> -> vector<32x1xf32>
    %c0_54 = arith.constant 0 : index
    %c0_55 = arith.constant 0 : index
    %90 = vector.load %arg13[%c0_54, %c0_55] : memref<1x1xf32, #tpu.memory_space<vmem>>, vector<1x1xf32>
    %91 = vector.broadcast %90 : vector<1x1xf32> to vector<32x1xf32>
    %92 = arith.addf %89, %91 : vector<32x1xf32>
    %c0_56 = arith.constant 0 : index
    %c0_57 = arith.constant 0 : index
    %93 = vector.load %arg17[%c0_56, %c0_57] : memref<32x1xf32, #tpu.memory_space<vmem>>, vector<32x1xf32>
    tpu.vector_store %arg17[%c0_56, %c0_57], %92 {strides = array<i32>} : memref<32x1xf32, #tpu.memory_space<vmem>>, vector<32x1xf32>,
    return
  }
}

</mosaic_0001>

<bundles_post_ra>
// kernel: sage_onehot_mlp_hetero2_forward.1
= control target key start
LH: loop header
LB: loop body
LE: loop exit
PB: predicated region body
PF: predicated region fallthrough
CT: control target
= control target key end

     0   :  { %s1261_s0 = inlined_call_operand.vmem [shape: f32[32,32], index: 0, kind: input, shape index: {}]   ;;  %s1262_s1 = inlined_call_operand.vmem [shape: f32[32,16], index: 1, kind: input, shape index: {}]   ;;  %s1263_s2 = inlined_call_operand.vmem [shape: f32[16,64], index: 2, kind: input, shape index: {}]   ;;  %s1264_s3 = inlined_call_operand.vmem [shape: f32[1,32], index: 3, kind: input, shape index: {}]   ;;  %s1265_s4 = inlined_call_operand.vmem [shape: f32[32,64], index: 4, kind: input, shape index: {}]   ;;  %s1266_s5 = inlined_call_operand.vmem [shape: f32[1,32], index: 5, kind: input, shape index: {}]   ;;  %s1267_s6 = inlined_call_operand.vmem [shape: f32[32,64], index: 6, kind: input, shape index: {}]   ;;  %s1268_s7 = inlined_call_operand.vmem [shape: f32[1,32], index: 7, kind: input, shape index: {}]   ;;  %s1269_s8 = inlined_call_operand.vmem [shape: f32[32,128], index: 8, kind: input, shape index: {}]   ;;  %s1270_s9 = inlined_call_operand.vmem [shape: f32[1,128], index: 9, kind: input, shape index: {}]   ;;  %s1271_s10 = inlined_call_operand.vmem [shape: f32[128,64], index: 10, kind: input, shape index: {}]   ;;  %s1272_s11 = inlined_call_operand.vmem [shape: f32[1,64], index: 11, kind: input, shape index: {}]   ;;  %s1273_s12 = inlined_call_operand.vmem [shape: f32[64,1], index: 12, kind: input, shape index: {}]   ;;  %s1274_s13 = inlined_call_operand.<no memory space> [shape: f32[1,1], index: 13, kind: input, shape index: {}]   ;;  %s1275_s14 = inlined_call_operand.hbm [shape: f32[32,32], index: 14, kind: output, shape index: {0}]   ;;  %s1276_s15 = inlined_call_operand.hbm [shape: f32[32,32], index: 15, kind: output, shape index: {1}]   ;;  %s1277_s16 = inlined_call_operand.hbm [shape: f32[32,32], index: 16, kind: output, shape index: {2}]   ;;  %s1278_s17 = inlined_call_operand.vmem [shape: f32[32,1], index: 17, kind: output, shape index: {3}]  }
   0x1   :  { %1281 = sst [smem:[#allocation10_spill]] %s1261_s0  ;;  %v23_v0 = vstv %s1274_s13 }
   0x2   :  { %1282 = sst [smem:[#allocation11_spill]] %s1262_s1  ;;  %24 = vst [vmem:[#allocation2] sm:$0x1] %v23_v0 }
   0x3   :  { %25 = vsyncpa [#allocation4], 0  ;;  %v64_v1 = vld [vmem:[%s1263_s2 + $0x8] sm:$0xff]  ;;  %v63_v2 = vld [vmem:[%s1263_s2] sm:$0xff]  ;;  %s1283_s18 = sld [smem:[#allocation11_spill]]  ;;  %vm65_vm0 = vcmask 130048  }
   0x4   :  { %753 = vmatpush.msra.mxu2 %v64_v1  ;;  %754 = vmatpush.msra.mxu3 %v64_v1 }
   0x5   :  { %92 = vmatpush.msra.mxu0 %v64_v1  ;;  %752 = vmatpush.msra.mxu1 %v64_v1 }
   0x6   :  { %756 = vmatpush.msra.mxu2 %v63_v2  ;;  %757 = vmatpush.msra.mxu3 %v63_v2 }
   0x9   :  { %v61_v3 = vld [vmem:[%s1283_s18 + $0x10] sm:$0xff]  ;;  %v62_v4 = vld [vmem:[%s1283_s18 + $0x18] sm:$0xff]  ;;  %v59_v5 = vld [vmem:[%s1283_s18] sm:$0xff] }
   0xa   :  { %v60_v6 = vld [vmem:[%s1283_s18 + $0x8] sm:$0xff]  ;;  %722 = vmatmul.msk.f32.vlgmr.msra.gmra.mxu2 %vm65_vm0, %v61_v3  ;;  %723 = vmatmul.msk.f32.vlgmr.msra.gmra.mxu3 %vm65_vm0, %v62_v4 }
   0xb   :  { %26 = vsyncpa [#allocation6], 0  ;;  %93 = vmatpush.msra.mxu0 %v63_v2  ;;  %755 = vmatpush.msra.mxu1 %v63_v2  ;;  %s853_s22 = smov 96   ;;  %s1284_s25 = sld [smem:[#allocation10_spill]]  ;;  %vm123_vm1 = vcmask 261120   ;;  %v184_v15 = vld [vmem:[%s1265_s4 + $0x18] sm:$0xff] }
   0xc   :  { %720 = vmatmul.msk.f32.vlgmr.msra.gmra.mxu0 %vm65_vm0, %v59_v5  ;;  %721 = vmatmul.msk.f32.vlgmr.msra.gmra.mxu1 %vm65_vm0, %v60_v6  ;;  %v183_v16 = vld [vmem:[%s1265_s4 + $0x10] sm:$0xff]  ;;  %v182_v17 = vld [vmem:[%s1265_s4 + $0x8] sm:$0xff]  ;;  %v181_v18 = vld [vmem:[%s1265_s4] sm:$0xff]  ;;  %vm547_vm6 = vcmask 523264   ;;  %s682_s26 = sshll.u32 %s1276_s15, 4  ;;  %s856_s27 = smov 128   ;;  %s683_s26 = int_to_ptr.hbm [resolvable:$true] %s682_s26 }
   0xd   :  { %209 = vmatpush.msrb.mxu2 %v184_v15  ;;  %v765_v20 = vld [vmem:[%s1264_s3] ss:$0 sm:$0xff]  ;;  %v290_v44 = vld [vmem:[%s1267_s6 + $0x18] sm:$0xff]  ;;  %v289_v45 = vld [vmem:[%s1267_s6 + $0x10] sm:$0xff]  ;;  %s857_s28 = smov 8   ;;  %s858_s30 = smov [#allocation3]  }
   0xe   :  { %315 = vmatpush.msrb.mxu0 %v290_v44  ;;  %v288_v46 = vld [vmem:[%s1267_s6 + $0x8] sm:$0xff]  ;;  %v287_v47 = vld [vmem:[%s1267_s6] sm:$0xff]  ;;  %s859_s18 = smov [#allocation7]   ;;  %s695_s6 = sshll.u32 %s1277_s16, 4  ;;  %vm658_vm10 = vcmask 7168   ;;  %s696_s6 = int_to_ptr.hbm [resolvable:$true] %s695_s6 }
   0xf   :  { %210 = vmatpush.msrb.mxu2 %v183_v16  ;;  %v766_v49 = vld [vmem:[%s1266_s5] ss:$0 sm:$0xff]  ;;  %s693_s19 = sshll.u32 %s859_s18, 4  ;;  %s694_s19 = int_to_ptr.vmem [resolvable:$true] %s693_s19 }
  0x10   :  { %316 = vmatpush.msrb.mxu0 %v289_v45  ;;  %v508_v45 = vld [vmem:[%s1271_s10 + $0x50] sm:$0xff] }
  0x11   :  { %v977_v11 = vld [vmem:[%s1284_s25] sm:$0xff]  ;;  %v985_v12 = vld [vmem:[%s1284_s25 + $0x8] sm:$0xff]  ;;  %v992_v13 = vld [vmem:[%s1284_s25 + $0x10] sm:$0xff]  ;;  %211 = vmatpush.msrb.mxu2 %v182_v17 }
  0x12   :  { %v999_v14 = vld [vmem:[%s1284_s25 + $0x18] sm:$0xff]  ;;  %317 = vmatpush.msrb.mxu0 %v288_v46  ;;  %v507_v46 = vld [vmem:[%s1271_s10 + $0x48] sm:$0xff] }
  0x13   :  { %212 = vmatpush.msrb.mxu2 %v181_v18 }
  0x14   :  { %318 = vmatpush.msrb.mxu0 %v287_v47 }
  0x89   :  { %v95_v7 = vpop.f32.mrf.mxu0  ;;  %v98_v10 = vpop.f32.mrf.mxu1 }
  0x8a   :  { %111 = vrot.lane.b32.xlu0 %v95_v7, %s853_s22 }
  0x8d   :  { %v101_v8 = vpop.f32.mrf.mxu2  ;;  %v104_v9 = vpop.f32.mrf.mxu3 }
  0x8e   :  { %148 = vmatpush.msrb.mxu1 %v104_v9  ;;  %115 = vrot.lane.b32.xlu1 %v101_v8, %s853_s22 }
  0x90   :  { %149 = vmatpush.msrb.mxu1 %v101_v8 }
  0x92   :  { %150 = vmatpush.msrb.mxu1 %v98_v10  ;;  %113 = vrot.lane.b32.xlu0 %v98_v10, %s853_s22  ;;  %v395_v10 = vld [vmem:[%s1269_s8 + $0x10] sm:$0xff] }
  0x94   :  { %151 = vmatpush.msrb.mxu1 %v95_v7 }
  0x95   :  { %724 = vmatmul.msk.f32.vlgmr.msrb.gmra.mxu1 %vm123_vm1, %v977_v11 }
  0x96   :  { %117 = vrot.lane.b32.xlu1 %v104_v9, %s853_s22  ;;  %v396_v9 = vld [vmem:[%s1269_s8 + $0x18] sm:$0xff] }
  0x97   :  { %425 = vmatpush.msra.mxu2 %v396_v9 }
  0x99   :  { %426 = vmatpush.msra.mxu2 %v395_v10  ;;  %v500_v10 = vld [vmem:[%s1271_s10 + $0x10] sm:$0xff] }
  0x9d   :  { %725 = vmatmul.msk.f32.gmra.mxu1 %vm123_vm1, %v985_v12 }
  0xa5   :  { %726 = vmatmul.msk.f32.gmra.mxu1 %vm123_vm1, %v992_v13 }
  0xad   :  { %727 = vmatmul.msk.f32.gmra.mxu1 %vm123_vm1, %v999_v14 }
  0xfc   :  { %v112_v19 = vpop.permute.xlu0 %111 }
 0x100   :  { %v116_v30 = vpop.permute.xlu1 %115 }
 0x104   :  { %v114_v25 = vpop.permute.xlu0 %113 }
 0x108   :  { %v118_v35 = vpop.permute.xlu1 %117 }
 0x112   :  { %v153_v21 = vpop.f32.mrf.mxu1 }
 0x113   :  { %v154_v22 = vadd.f32 %v153_v21, %v112_v19 }
 0x115   :  { %v169_v23 = vadd.f32 %v765_v20, %v154_v22 }
 0x117   :  { %v173_v24 = vmax.f32 %v169_v23, 0.0 }
 0x119   :  { %177 = vst.msk [vmem:[#allocation3] sm:$0xff] %vm123_vm1, %v173_v24  ;;  %728 = vmatmul.msk.f32.vlgmr.msrb.gmra.mxu2 %vm123_vm1, %v173_v24 }
 0x11a   :  { %v156_v26 = vpop.f32.mrf.mxu1 }
 0x11b   :  { %v157_v27 = vadd.f32 %v156_v26, %v114_v25 }
 0x11d   :  { %v170_v28 = vadd.f32 %v765_v20, %v157_v27 }
 0x11f   :  { %v174_v29 = vmax.f32 %v170_v28, 0.0 }
 0x121   :  { %178 = vst.msk [vmem:[#allocation3 + $0x8] sm:$0xff] %vm123_vm1, %v174_v29  ;;  %729 = vmatmul.msk.f32.gmra.mxu2 %vm123_vm1, %v174_v29 }
 0x122   :  { %v159_v31 = vpop.f32.mrf.mxu1 }
 0x123   :  { %v160_v32 = vadd.f32 %v159_v31, %v116_v30 }
 0x125   :  { %v171_v33 = vadd.f32 %v765_v20, %v160_v32 }
 0x127   :  { %v175_v34 = vmax.f32 %v171_v33, 0.0 }
 0x129   :  { %179 = vst.msk [vmem:[#allocation3 + $0x10] sm:$0xff] %vm123_vm1, %v175_v34  ;;  %730 = vmatmul.msk.f32.gmra.mxu2 %vm123_vm1, %v175_v34 }
 0x12a   :  { %v162_v36 = vpop.f32.mrf.mxu1 }
 0x12b   :  { %v163_v37 = vadd.f32 %v162_v36, %v118_v35  ;;  %v513_v35 = vld [vmem:[%s1271_s10 + $0x78] sm:$0xff] }
 0x12d   :  { %v172_v38 = vadd.f32 %v765_v20, %v163_v37  ;;  %v512_v37 = vld [vmem:[%s1271_s10 + $0x70] sm:$0xff] }
 0x12f   :  { %v176_v39 = vmax.f32 %v172_v38, 0.0  ;;  %v511_v38 = vld [vmem:[%s1271_s10 + $0x68] sm:$0xff] }
 0x131   :  { %180 = vst.msk [vmem:[#allocation3 + $0x18] sm:$0xff] %vm123_vm1, %v176_v39  ;;  %731 = vmatmul.msk.f32.gmra.mxu2 %vm123_vm1, %v176_v39  ;;  %v854_v39 = vmov 32.0  }
 0x132   :  { %771 = vrcp.f32 %v854_v39 }
 0x138   :  { %v772_v47 = vpop.eup %771 }
 0x139   :  { %vm456_vm2 = vweird.f32 %v772_v47 }
 0x19c   :  { %v214_v40 = vpop.f32.mrf.mxu2 }
 0x19d   :  { %230 = vrot.lane.b32.xlu2 %v214_v40, %s853_s22 }
 0x1a4   :  { %v217_v41 = vpop.f32.mrf.mxu2 }
 0x1a5   :  { %232 = vrot.lane.b32.xlu2 %v217_v41, %s853_s22 }
 0x1ac   :  { %v220_v42 = vpop.f32.mrf.mxu2 }
 0x1ad   :  { %234 = vrot.lane.b32.xlu0 %v220_v42, %s853_s22 }
 0x1b4   :  { %v223_v43 = vpop.f32.mrf.mxu2 }
 0x1b5   :  { %236 = vrot.lane.b32.xlu1 %v223_v43, %s853_s22  ;;  %254 = vmatpush.msrb.mxu3 %v223_v43 }
 0x1b7   :  { %255 = vmatpush.msrb.mxu3 %v220_v42  ;;  %v509_v42 = vld [vmem:[%s1271_s10 + $0x58] sm:$0xff] }
 0x1b9   :  { %256 = vmatpush.msrb.mxu3 %v217_v41  ;;  %v768_v41 = vld [vmem:[%s1270_s9] ss:$0 sm:$0xff] }
 0x1bb   :  { %257 = vmatpush.msrb.mxu3 %v214_v40  ;;  %v510_v40 = vld [vmem:[%s1271_s10 + $0x60] sm:$0xff] }
 0x1bc   :  { %732 = vmatmul.msk.f32.vlgmr.msrb.gmra.mxu3 %vm123_vm1, %v977_v11 }
 0x1bd   :  { %518 = vmatpush.msra.mxu3 %v513_v35 }
 0x1bf   :  { %519 = vmatpush.msra.mxu3 %v512_v37 }
 0x1c1   :  { %520 = vmatpush.msra.mxu3 %v511_v38 }
 0x1c3   :  { %521 = vmatpush.msra.mxu3 %v510_v40 }
 0x1c4   :  { %733 = vmatmul.msk.f32.gmra.mxu3 %vm123_vm1, %v985_v12 }
 0x1c5   :  { %522 = vmatpush.msra.mxu3 %v509_v42 }
 0x1c7   :  { %523 = vmatpush.msra.mxu3 %v508_v45 }
 0x1c9   :  { %524 = vmatpush.msra.mxu3 %v507_v46 }
 0x1cc   :  { %734 = vmatmul.msk.f32.gmra.mxu3 %vm123_vm1, %v992_v13 }
 0x1d4   :  { %735 = vmatmul.msk.f32.gmra.mxu3 %vm123_vm1, %v999_v14 }
 0x1f7   :  { %v231_v48 = vpop.permute.xlu2 %230 }
 0x1ff   :  { %v233_v54 = vpop.permute.xlu2 %232 }
 0x21f   :  { %v235_v59 = vpop.permute.xlu0 %234 }
 0x227   :  { %v237_v0 = vpop.permute.xlu1 %236 }
 0x23f   :  { %v259_v50 = vpop.f32.mrf.mxu3 }
 0x240   :  { %v260_v51 = vadd.f32 %v259_v50, %v231_v48  ;;  %v506_v50 = vld [vmem:[%s1271_s10 + $0x40] sm:$0xff] }
 0x241   :  { %525 = vmatpush.msra.mxu3 %v506_v50 }
 0x242   :  { %v275_v52 = vadd.f32 %v766_v49, %v260_v51 }
 0x244   :  { %v279_v53 = vmax.f32 %v275_v52, 0.0  ;;  %v505_v52 = vld [vmem:[%s1271_s10 + $0x38] sm:$0xff] }
 0x245   :  { %526 = vmatpush.msra.mxu3 %v505_v52  ;;  %v769_v52 = vld [vmem:[%s1272_s11] ss:$0 sm:$0xff]  ;;  %s667_s11 = sshll.u32 %s858_s30, 4  ;;  %s668_s11 = int_to_ptr.vmem [resolvable:$true] %s667_s11 }
 0x246   :  { %283 = vst.msk [vmem:[#allocation5] sm:$0xff] %vm123_vm1, %v279_v53  ;;  %736 = vmatmul.msk.f32.vlgmr.msrb.gmra.mxu0 %vm123_vm1, %v279_v53  ;;  %v452_v53 = vmul.f32 32.0, %v772_v47 }
 0x247   :  { %v262_v55 = vpop.f32.mrf.mxu3 }
 0x248   :  { %v263_v56 = vadd.f32 %v262_v55, %v233_v54 }
 0x24a   :  { %v276_v57 = vadd.f32 %v766_v49, %v263_v56 }
 0x24c   :  { %v280_v58 = vmax.f32 %v276_v57, 0.0  ;;  %v504_v57 = vld [vmem:[%s1271_s10 + $0x30] sm:$0xff] }
 0x24d   :  { %527 = vmatpush.msra.mxu3 %v504_v57 }
 0x24e   :  { %284 = vst.msk [vmem:[#allocation5 + $0x8] sm:$0xff] %vm123_vm1, %v280_v58  ;;  %737 = vmatmul.msk.f32.gmra.mxu0 %vm123_vm1, %v280_v58 }
 0x24f   :  { %v265_v60 = vpop.f32.mrf.mxu3 }
 0x250   :  { %v266_v61 = vadd.f32 %v265_v60, %v235_v59 }
 0x252   :  { %v277_v62 = vadd.f32 %v766_v49, %v266_v61 }
 0x254   :  { %v281_v63 = vmax.f32 %v277_v62, 0.0  ;;  %v503_v62 = vld [vmem:[%s1271_s10 + $0x28] sm:$0xff] }
 0x255   :  { %528 = vmatpush.msra.mxu3 %v503_v62 }
 0x256   :  { %285 = vst.msk [vmem:[#allocation5 + $0x10] sm:$0xff] %vm123_vm1, %v281_v63  ;;  %738 = vmatmul.msk.f32.gmra.mxu0 %vm123_vm1, %v281_v63  ;;  %v453_v63 = vsub.f32 1.0, %v452_v53 }
 0x257   :  { %v268_v1 = vpop.f32.mrf.mxu3 }
 0x258   :  { %v269_v2 = vadd.f32 %v268_v1, %v237_v0 }
 0x25a   :  { %v278_v3 = vadd.f32 %v766_v49, %v269_v2 }
 0x25c   :  { %v282_v4 = vmax.f32 %v278_v3, 0.0  ;;  %v502_v3 = vld [vmem:[%s1271_s10 + $0x20] sm:$0xff] }
 0x25d   :  { %529 = vmatpush.msra.mxu3 %v502_v3  ;;  %v612_v3 = vld [vmem:[%s1273_s12 + $0x38] sm:$0xff] }
 0x25e   :  { %286 = vst.msk [vmem:[#allocation5 + $0x18] sm:$0xff] %vm123_vm1, %v282_v4  ;;  %739 = vmatmul.msk.f32.gmra.mxu0 %vm123_vm1, %v282_v4 }
 0x25f   :  { %637 = vmatpush.msra.mxu0 %v612_v3 }
 0x2c3   :  { %v320_v5 = vpop.f32.mrf.mxu0 }
 0x2c4   :  { %336 = vrot.lane.b32.xlu2 %v320_v5, %s853_s22 }
 0x2cb   :  { %v323_v6 = vpop.f32.mrf.mxu0 }
 0x2cc   :  { %338 = vrot.lane.b32.xlu0 %v323_v6, %s853_s22 }
 0x2d3   :  { %v326_v7 = vpop.f32.mrf.mxu0 }
 0x2d4   :  { %340 = vrot.lane.b32.xlu1 %v326_v7, %s853_s22 }
 0x2db   :  { %v329_v8 = vpop.f32.mrf.mxu0 }
 0x2dc   :  { %342 = vrot.lane.b32.xlu2 %v329_v8, %s853_s22  ;;  %360 = vmatpush.msra.mxu1 %v329_v8 }
 0x2de   :  { %361 = vmatpush.msra.mxu1 %v326_v7  ;;  %v454_v7 = vmul.f32 %v772_v47, %v453_v63 }
 0x2e0   :  { %362 = vmatpush.msra.mxu1 %v323_v6  ;;  %v501_v6 = vld [vmem:[%s1271_s10 + $0x18] sm:$0xff] }
 0x2e1   :  { %530 = vmatpush.msra.mxu3 %v501_v6 }
 0x2e2   :  { %363 = vmatpush.msra.mxu1 %v320_v5 }
 0x2e3   :  { %740 = vmatmul.msk.f32.vlgmr.msra.gmra.mxu1 %vm123_vm1, %v977_v11  ;;  %v394_v11 = vld [vmem:[%s1269_s8 + $0x8] sm:$0xff]  ;;  %531 = vmatpush.msra.mxu3 %v500_v10 }
 0x2e4   :  { %427 = vmatpush.msra.mxu2 %v394_v11 }
 0x2eb   :  { %741 = vmatmul.msk.f32.gmra.mxu1 %vm123_vm1, %v985_v12  ;;  %v393_v12 = vld [vmem:[%s1269_s8] sm:$0xff] }
 0x2ec   :  { %428 = vmatpush.msra.mxu2 %v393_v12 }
 0x2f3   :  { %742 = vmatmul.msk.f32.gmra.mxu1 %vm123_vm1, %v992_v13  ;;  %v767_v13 = vld [vmem:[%s1268_s7] ss:$0 sm:$0xff] }
 0x2fb   :  { %743 = vmatmul.msk.f32.gmra.mxu1 %vm123_vm1, %v999_v14 }
 0x31e   :  { %v337_v14 = vpop.permute.xlu2 %336 }
 0x336   :  { %v343_v29 = vpop.permute.xlu2 %342 }
 0x33e   :  { %v339_v19 = vpop.permute.xlu0 %338 }
 0x346   :  { %v341_v24 = vpop.permute.xlu1 %340 }
 0x360   :  { %v365_v15 = vpop.f32.mrf.mxu1 }
 0x361   :  { %v366_v16 = vadd.f32 %v365_v15, %v337_v14  ;;  %v455_v14 = vadd.f32 %v772_v47, %v454_v7 }
 0x363   :  { %v381_v17 = vadd.f32 %v767_v13, %v366_v16 }
 0x365   :  { %v385_v18 = vmax.f32 %v381_v17, 0.0  ;;  %v498_v17 = vld [vmem:[%s1271_s10] sm:$0xff] }
 0x367   :  { %389 = vst.msk [vmem:[#allocation7] sm:$0xff] %vm123_vm1, %v385_v18  ;;  %744 = vmatmul.msk.f32.vlgmr.msra.gmra.mxu2 %vm123_vm1, %v385_v18 }
 0x368   :  { %v368_v20 = vpop.f32.mrf.mxu1 }
 0x369   :  { %v369_v21 = vadd.f32 %v368_v20, %v339_v19  ;;  %v1167_v20 = vsel %vm456_vm2, %v772_v47, %v455_v14 }
 0x36b   :  { %v382_v22 = vadd.f32 %v767_v13, %v369_v21 }
 0x36d   :  { %v386_v23 = vmax.f32 %v382_v22, 0.0 }
 0x36f   :  { %390 = vst.msk [vmem:[#allocation7 + $0x8] sm:$0xff] %vm123_vm1, %v386_v23  ;;  %745 = vmatmul.msk.f32.gmra.mxu2 %vm123_vm1, %v386_v23 }
 0x370   :  { %v371_v25 = vpop.f32.mrf.mxu1 }
 0x371   :  { %v372_v26 = vadd.f32 %v371_v25, %v341_v24 }
 0x373   :  { %v383_v27 = vadd.f32 %v767_v13, %v372_v26 }
 0x375   :  { %v387_v28 = vmax.f32 %v383_v27, 0.0 }
 0x377   :  { %391 = vst.msk [vmem:[#allocation7 + $0x10] sm:$0xff] %vm123_vm1, %v387_v28  ;;  %746 = vmatmul.msk.f32.gmra.mxu2 %vm123_vm1, %v387_v28 }
 0x378   :  { %v374_v30 = vpop.f32.mrf.mxu1 }
 0x379   :  { %v375_v31 = vadd.f32 %v374_v30, %v343_v29 }
 0x37b   :  { %v384_v32 = vadd.f32 %v767_v13, %v375_v31  ;;  %v499_v13 = vld [vmem:[%s1271_s10 + $0x8] sm:$0xff]  ;;  %s669_s10 = sshll.u32 %s1275_s14, 4  ;;  %s670_s10 = int_to_ptr.hbm [resolvable:$true] %s669_s10 }
 0x37c   :  { %532 = vmatpush.msra.mxu3 %v499_v13  ;;  %v609_v13 = vld [vmem:[%s1273_s12 + $0x20] sm:$0xff] }
 0x37d   :  { %v388_v33 = vmax.f32 %v384_v32, 0.0  ;;  %675 = dma.vmem_to_hbm [thread:$0]  %s668_s11, 512, %s670_s10, [#allocation4], %s856_s27, %s856_s27, %s857_s28  }
 0x37e   :  { %533 = vmatpush.msra.mxu3 %v498_v17 }
 0x37f   :  { %392 = vst.msk [vmem:[#allocation7 + $0x18] sm:$0xff] %vm123_vm1, %v388_v33  ;;  %747 = vmatmul.msk.f32.gmra.mxu2 %vm123_vm1, %v388_v33 }
 0x3ea   :  { %v430_v34 = vpop.f32.mrf.mxu2 }
 0x3eb   :  { %v1122_v48 = vadd.f32 %v768_v41, %v430_v34 }
 0x3ed   :  { %v459_v54 = vmul.f32 %v1122_v48, %v1122_v48 }
 0x3f2   :  { %v433_v36 = vpop.f32.mrf.mxu2 }
 0x3f3   :  { %v1114_v44 = vadd.f32 %v768_v41, %v433_v36 }
 0x3f5   :  { %v460_v51 = vmul.f32 %v1114_v44, %v1114_v44  ;;  %v442_v55 = vadd.f32 %v1114_v44, %v1122_v48 }
 0x3f7   :  { %v463_v59 = vadd.f32 %v460_v51, %v459_v54 }
 0x3fa   :  { %v436_v43 = vpop.f32.mrf.mxu2 }
 0x3fb   :  { %v1124_v49 = vadd.f32 %v768_v41, %v436_v43 }
 0x3fd   :  { %v461_v56 = vmul.f32 %v1124_v49, %v1124_v49  ;;  %v443_v60 = vadd.f32 %v442_v55, %v1124_v49 }
 0x3ff   :  { %v464_v0 = vadd.f32 %v463_v59, %v461_v56 }
 0x402   :  { %v439_v58 = vpop.f32.mrf.mxu2 }
 0x403   :  { %v1144_v61 = vadd.f32 %v768_v41, %v439_v58 }
 0x405   :  { %v444_v1 = vadd.f32 %v443_v60, %v1144_v61  ;;  %v462_v2 = vmul.f32 %v1144_v61, %v1144_v61 }
 0x407   :  { %v445_v4 = vrot.slane %v444_v1, 4  ;;  %v465_v5 = vadd.f32 %v464_v0, %v462_v2 }
 0x409   :  { %v446_v8 = vadd.f32 %v445_v4, %v444_v1  ;;  %v466_v9 = vrot.slane %v465_v5, 4  ;;  %v611_v4 = vld [vmem:[%s1273_s12 + $0x30] sm:$0xff] }
 0x40a   :  { %638 = vmatpush.msra.mxu0 %v611_v4 }
 0x40b   :  { %v447_v11 = vrot.slane %v446_v8, 2  ;;  %v467_v12 = vadd.f32 %v466_v9, %v465_v5  ;;  %v610_v9 = vld [vmem:[%s1273_s12 + $0x28] sm:$0xff] }
 0x40c   :  { %639 = vmatpush.msra.mxu0 %v610_v9 }
 0x40d   :  { %v448_v15 = vadd.f32 %v447_v11, %v446_v8  ;;  %v468_v16 = vrot.slane %v467_v12, 2 }
 0x40e   :  { %640 = vmatpush.msra.mxu0 %v609_v13 }
 0x40f   :  { %v449_v18 = vrot.slane %v448_v15, 1  ;;  %v469_v19 = vadd.f32 %v468_v16, %v467_v12  ;;  %v608_v16 = vld [vmem:[%s1273_s12 + $0x18] sm:$0xff] }
 0x410   :  { %641 = vmatpush.msra.mxu0 %v608_v16 }
 0x411   :  { %v450_v21 = vadd.f32 %v449_v18, %v448_v15  ;;  %v470_v22 = vrot.slane %v469_v19, 1 }
 0x413   :  { %v458_v23 = vmul.f32 %v1167_v20, %v450_v21  ;;  %v471_v24 = vadd.f32 %v470_v22, %v469_v19  ;;  %v607_v19 = vld [vmem:[%s1273_s12 + $0x10] sm:$0xff] }
 0x414   :  { %642 = vmatpush.msra.mxu0 %v607_v19 }
 0x415   :  { %v472_v25 = vmul.f32 %v471_v24, %v1167_v20  ;;  %v473_v26 = vmul.f32 %v458_v23, %v458_v23  ;;  %v475_v35 = vsub.f32 %v1122_v48, %v458_v23  ;;  %v476_v39 = vsub.f32 %v1114_v44, %v458_v23 }
 0x416   :  { %v477_v42 = vsub.f32 %v1124_v49, %v458_v23  ;;  %v478_v46 = vsub.f32 %v1144_v61, %v458_v23  ;;  %v606_v23 = vld [vmem:[%s1273_s12 + $0x8] sm:$0xff] }
 0x417   :  { %v474_v27 = vsub.f32 %v472_v25, %v473_v26  ;;  %v605_v26 = vld [vmem:[%s1273_s12] sm:$0xff]  ;;  %643 = vmatpush.msra.mxu0 %v606_v23  ;;  %s855_s12 = smov [#allocation5]  }
 0x418   :  { %s680_s25 = sshll.u32 %s855_s12, 4  ;;  %s681_s25 = int_to_ptr.vmem [resolvable:$true] %s680_s25 }
 0x419   :  { %v479_v28 = vadd.f32 1e-05, %v474_v27  ;;  %644 = vmatpush.msra.mxu0 %v605_v26  ;;  %688 = dma.vmem_to_hbm [thread:$0]  %s681_s25, 512, %s683_s26, [#allocation6], %s856_s27, %s856_s27, %s857_s28  }
 0x41a   :  { %701 = dma.vmem_to_hbm [thread:$0]  %s694_s19, 512, %s696_s6, [#allocation6], %s856_s27, %s856_s27, %s857_s28  }
 0x41b   :  { %773 = vrsqrt.f32 %v479_v28  ;;  %vm486_vm4 = vweird.f32 %v479_v28 }
 0x421   :  { %v774_v29 = vpop.eup %773 }
 0x422   :  { %v481_v30 = vmul.f32 %v774_v29, %v479_v28  ;;  %vm487_vm3 = vweird.f32 %v774_v29 }
 0x423   :  { %vm488_vm5 = vmor %vm486_vm4, %vm487_vm3 }
 0x424   :  { %v482_v31 = vmul.f32 %v774_v29, %v481_v30 }
 0x426   :  { %v483_v32 = vmul.f32 0.5, %v482_v31 }
 0x428   :  { %v484_v33 = vsub.f32 1.5, %v483_v32 }
 0x42a   :  { %v485_v34 = vmul.f32 %v774_v29, %v484_v33 }
 0x42c   :  { %v489_v36 = vsel %vm488_vm5, %v774_v29, %v485_v34 }
 0x42d   :  { %v490_v37 = vmul.f32 %v489_v36, %v475_v35  ;;  %v491_v40 = vmul.f32 %v489_v36, %v476_v39  ;;  %v492_v43 = vmul.f32 %v489_v36, %v477_v42  ;;  %v493_v47 = vmul.f32 %v489_v36, %v478_v46 }
 0x42f   :  { %v494_v38 = vmax.f32 %v490_v37, 0.0  ;;  %v495_v41 = vmax.f32 %v491_v40, 0.0  ;;  %v496_v45 = vmax.f32 %v492_v43, 0.0  ;;  %v497_v50 = vmax.f32 %v493_v47, 0.0 }
 0x431   :  { %534 = vmatmul.f32.vlgmr.msra.gmra.mxu3 %v494_v38 }
 0x439   :  { %537 = vmatmul.f32.gmra.mxu3 %v495_v41 }
 0x441   :  { %540 = vmatmul.f32.gmra.mxu3 %v496_v45 }
 0x449   :  { %543 = vmatmul.f32.gmra.mxu3 %v497_v50 }
 0x4b4   :  { %v535_v48 = vpop.f32.mrf.mxu3 }
 0x4b5   :  { %v1180_v54 = vadd.f32 %v769_v52, %v535_v48 }
 0x4b7   :  { %v562_v56 = vmul.f32 %v1180_v54, %v1180_v54  ;;  %v548_v59 = vsel %vm547_vm6, %v1180_v54, 0.0 }
 0x4b9   :  { %v566_v0 = vsel %vm547_vm6, %v562_v56, 0.0 }
 0x4bc   :  { %v538_v51 = vpop.f32.mrf.mxu3 }
 0x4bd   :  { %v1178_v44 = vadd.f32 %v769_v52, %v538_v51 }
 0x4bf   :  { %v563_v55 = vmul.f32 %v1178_v44, %v1178_v44  ;;  %v549_v57 = vsel %vm547_vm6, %v1178_v44, 0.0 }
 0x4c0   :  { %v550_v62 = vadd.f32 %v549_v57, %v548_v59 }
 0x4c1   :  { %v567_v60 = vsel %vm547_vm6, %v563_v55, 0.0 }
 0x4c2   :  { %v568_v5 = vadd.f32 %v567_v60, %v566_v0 }
 0x4c4   :  { %v541_v53 = vpop.f32.mrf.mxu3 }
 0x4c5   :  { %v1182_v49 = vadd.f32 %v769_v52, %v541_v53 }
 0x4c7   :  { %v564_v58 = vmul.f32 %v1182_v49, %v1182_v49  ;;  %v551_v61 = vsel %vm547_vm6, %v1182_v49, 0.0 }
 0x4c8   :  { %v552_v6 = vadd.f32 %v551_v61, %v550_v62 }
 0x4c9   :  { %v569_v1 = vsel %vm547_vm6, %v564_v58, 0.0 }
 0x4ca   :  { %v570_v10 = vadd.f32 %v569_v1, %v568_v5 }
 0x4cc   :  { %v544_v63 = vpop.f32.mrf.mxu3 }
 0x4cd   :  { %v1199_v2 = vadd.f32 %v769_v52, %v544_v63 }
 0x4cf   :  { %v553_v7 = vsel %vm547_vm6, %v1199_v2, 0.0  ;;  %v565_v8 = vmul.f32 %v1199_v2, %v1199_v2 }
 0x4d0   :  { %v554_v11 = vadd.f32 %v553_v7, %v552_v6 }
 0x4d1   :  { %v571_v12 = vsel %vm547_vm6, %v565_v8, 0.0 }
 0x4d2   :  { %v555_v14 = vrot.slane %v554_v11, 4  ;;  %v572_v15 = vadd.f32 %v571_v12, %v570_v10 }
 0x4d4   :  { %v556_v17 = vadd.f32 %v555_v14, %v554_v11  ;;  %v573_v18 = vrot.slane %v572_v15, 4 }
 0x4d6   :  { %v557_v21 = vrot.slane %v556_v17, 2  ;;  %v574_v22 = vadd.f32 %v573_v18, %v572_v15 }
 0x4d8   :  { %v558_v24 = vadd.f32 %v557_v21, %v556_v17  ;;  %v575_v25 = vrot.slane %v574_v22, 2 }
 0x4da   :  { %v559_v27 = vrot.slane %v558_v24, 1  ;;  %v576_v28 = vadd.f32 %v575_v25, %v574_v22 }
 0x4dc   :  { %v560_v29 = vadd.f32 %v559_v27, %v558_v24  ;;  %v577_v30 = vrot.slane %v576_v28, 1 }
 0x4de   :  { %v561_v31 = vmul.f32 %v560_v29, %v1167_v20  ;;  %v578_v32 = vadd.f32 %v577_v30, %v576_v28 }
 0x4e0   :  { %v579_v33 = vmul.f32 %v578_v32, %v1167_v20  ;;  %v580_v34 = vmul.f32 %v561_v31, %v561_v31  ;;  %v582_v43 = vsub.f32 %v1180_v54, %v561_v31  ;;  %v583_v20 = vsub.f32 %v1178_v44, %v561_v31  ;;  %v770_v44 = vld [vmem:[#allocation2] ss:$0 sm:$0xff] }
 0x4e1   :  { %v584_v51 = vsub.f32 %v1182_v49, %v561_v31  ;;  %v585_v55 = vsub.f32 %v1199_v2, %v561_v31 }
 0x4e2   :  { %v581_v35 = vsub.f32 %v579_v33, %v580_v34 }
 0x4e4   :  { %v586_v36 = vadd.f32 1e-05, %v581_v35 }
 0x4e6   :  { %775 = vrsqrt.f32 %v586_v36  ;;  %vm593_vm8 = vweird.f32 %v586_v36 }
 0x4ec   :  { %v776_v37 = vpop.eup %775 }
 0x4ed   :  { %v588_v38 = vmul.f32 %v776_v37, %v586_v36  ;;  %vm594_vm7 = vweird.f32 %v776_v37 }
 0x4ee   :  { %vm595_vm9 = vmor %vm593_vm8, %vm594_vm7 }
 0x4ef   :  { %v589_v39 = vmul.f32 %v776_v37, %v588_v38 }
 0x4f1   :  { %v590_v40 = vmul.f32 0.5, %v589_v39 }
 0x4f3   :  { %v591_v41 = vsub.f32 1.5, %v590_v40 }
 0x4f5   :  { %v592_v42 = vmul.f32 %v776_v37, %v591_v41 }
 0x4f7   :  { %v596_v45 = vsel %vm595_vm9, %v776_v37, %v592_v42 }
 0x4f8   :  { %v597_v46 = vmul.f32 %v596_v45, %v582_v43  ;;  %v598_v50 = vmul.f32 %v596_v45, %v583_v20  ;;  %v599_v52 = vmul.f32 %v596_v45, %v584_v51  ;;  %v600_v54 = vmul.f32 %v596_v45, %v585_v55 }
 0x4fa   :  { %v601_v47 = vmax.f32 %v597_v46, 0.0  ;;  %v602_v48 = vmax.f32 %v598_v50, 0.0  ;;  %v603_v53 = vmax.f32 %v599_v52, 0.0  ;;  %v604_v56 = vmax.f32 %v600_v54, 0.0 }
 0x4fc   :  { %748 = vmatmul.msk.f32.vlgmr.msra.gmra.mxu0 %vm547_vm6, %v601_v47 }
 0x504   :  { %749 = vmatmul.msk.f32.gmra.mxu0 %vm547_vm6, %v602_v48 }
 0x50c   :  { %750 = vmatmul.msk.f32.gmra.mxu0 %vm547_vm6, %v603_v53 }
 0x514   :  { %751 = vmatmul.msk.f32.gmra.mxu0 %vm547_vm6, %v604_v56 }
 0x579   :  { %v646_v49 = vpop.f32.mrf.mxu0 }
 0x57a   :  { %v647_v57 = vadd.f32 %v770_v44, %v646_v49 }
 0x57c   :  { %659 = vst.msk [vmem:[%s1278_s17] sm:$0xff] %vm658_vm10, %v647_v57 }
 0x581   :  { %v649_v58 = vpop.f32.mrf.mxu0 }
 0x582   :  { %v650_v59 = vadd.f32 %v770_v44, %v649_v58 }
 0x584   :  { %660 = vst.msk [vmem:[%s1278_s17 + $0x8] sm:$0xff] %vm658_vm10, %v650_v59 }
 0x589   :  { %v652_v60 = vpop.f32.mrf.mxu0 }
 0x58a   :  { %v653_v61 = vadd.f32 %v770_v44, %v652_v60 }
 0x58c   :  { %661 = vst.msk [vmem:[%s1278_s17 + $0x10] sm:$0xff] %vm658_vm10, %v653_v61 }
 0x591   :  { %v655_v62 = vpop.f32.mrf.mxu0 }
 0x592   :  { %v656_v63 = vadd.f32 %v770_v44, %v655_v62 }
 0x594   :  { %662 = vst.msk [vmem:[%s1278_s17 + $0x18] sm:$0xff] %vm658_vm10, %v656_v63 }
 0x595   :  { %849 = dma.done.wait [#allocation4], 512  }
 0x596   :  { %850 = vsyncadd [#allocation4], 4294966784 }
 0x597   :  { %851 = dma.done.wait [#allocation6], 1024  }
 0x598   :  { %852 = vsyncadd [#allocation6], 4294966272 }
 0x599   :  { %718 = vsyncpa [#allocation4], 1 }
 0x59a   :  { %719 = vsyncpa [#allocation6], 1 }

</bundles_post_ra>
